<compile_context>
chip_gen: v5e
topology: v5e:2x2
jax: 0.10.0
libtpu: 0.0.40
codegen_flags: <defaults>
</compile_context>

<pallas_src>
import functools
import math

import jax
import jax.numpy as jnp
from jax import lax
from jax.experimental import pallas as pl
from jax.experimental.pallas import tpu as pltpu


def _proj_scores_kernel(x_ref, wqkv_ref, bqkv_ref, attn_ref, v_ref, *, out_ch):
    """Per B-tile: fused QKV projection, emit V, accumulate q^T k; softmax on
    the final tile.  attn_ref is resident across the grid (constant block idx)."""
    i = pl.program_id(0)
    nb = pl.num_programs(0)

    x = x_ref[...].astype(jnp.float32)                              # (tb, C)
    # Single fused projection -> (tb, 3*out).  Q columns are pre-scaled by
    # 1/sqrt(dims) in the wrapper.
    qkv = jnp.dot(x, wqkv_ref[...],
                  preferred_element_type=jnp.float32) + bqkv_ref[...]
    k = qkv[:, :out_ch]
    q = qkv[:, out_ch:2 * out_ch]
    v = qkv[:, 2 * out_ch:]

    v_ref[...] = v.astype(v_ref.dtype)

    @pl.when(i == 0)
    def _():
        attn_ref[...] = jnp.zeros_like(attn_ref)

    # scores += q^T @ k : contract the batch axis directly (no explicit q.T).
    attn_ref[...] += lax.dot_general(
        q, k, dimension_numbers=(((0,), (0,)), ((), ())),
        preferred_element_type=jnp.float32)

    @pl.when(i == nb - 1)
    def _():
        s = attn_ref[...]
        m = jnp.max(s, axis=-1, keepdims=True)
        e = jnp.exp(s - m)
        denom = jnp.sum(e, axis=-1, keepdims=True)
        attn_ref[...] = e * pl.reciprocal(denom, approx=True)


def _apply_kernel(attn_ref, v_ref, wo_ref, bo_ref, o_ref):
    """Per B-tile: z = v @ attn, out = z @ wo + bo."""
    z = jnp.dot(v_ref[...].astype(jnp.float32), attn_ref[...],
                preferred_element_type=jnp.float32)
    out = jnp.dot(z, wo_ref[...], preferred_element_type=jnp.float32) + bo_ref[...]
    o_ref[...] = out.astype(o_ref.dtype)


def _pick_block_b(B, requested=None):
    if requested is not None:
        assert B % requested == 0, "block_b must divide B"
        return requested
    # Largest power-of-two tile (<=512) dividing B; keeps double-buffered x
    # tiles far under v7x's 64 MiB VMEM even for large C.
    for tb in (512, 256, 128, 64, 32, 16, 8):
        if B % tb == 0:
            return tb
    return B  # odd batch: single full-array block


def ultimus_block(x, params, dims, *, block_b=None):
    """x: [B, in_channels] f32.  params: weights stored as [in, out]."""
    B, C = x.shape
    O = params["wk"].shape[1]
    scale = 1.0 / math.sqrt(dims)

    # Fuse QKV weights/biases; fold the attention scale into the Q slice.
    wqkv = jnp.concatenate(
        [params["wk"], params["wq"] * scale, params["wv"]], axis=1)   # (C, 3O)
    bqkv = jnp.concatenate(
        [params["bk"], params["bq"] * scale, params["bv"]], axis=1)   # (1, 3O)

    tb = _pick_block_b(B, block_b)
    nb = B // tb
    itemsize = x.dtype.itemsize

    # ---- Phase 1: fused projections + accumulated q^T k + softmax ----------
    cost1 = pl.CostEstimate(
        flops=2 * B * C * 3 * O + 2 * B * O * O,
        transcendentals=O * O,
        bytes_accessed=(B * C + C * 3 * O + 3 * O + B * O) * itemsize + O * O * 4)
    attn, v_all = pl.pallas_call(
        functools.partial(_proj_scores_kernel, out_ch=O),
        grid=(nb,),
        in_specs=[pl.BlockSpec((tb, C), lambda i: (i, 0)),
                  pl.BlockSpec((C, 3 * O), lambda i: (0, 0)),
                  pl.BlockSpec((1, 3 * O), lambda i: (0, 0))],
        out_specs=(pl.BlockSpec((O, O), lambda i: (0, 0)),      # resident scores/attn
                   pl.BlockSpec((tb, O), lambda i: (i, 0))),
        out_shape=(jax.ShapeDtypeStruct((O, O), jnp.float32),
                   jax.ShapeDtypeStruct((B, O), x.dtype)),
        compiler_params=pltpu.CompilerParams(
            dimension_semantics=("arbitrary",)),   # reduction over B-tiles
        cost_estimate=cost1,
    )(x, wqkv, bqkv)

    # ---- Phase 2: v @ attn + output projection (parallel over B-tiles) -----
    cost2 = pl.CostEstimate(
        flops=2 * B * O * O + 2 * B * O * C,
        transcendentals=0,
        bytes_accessed=O * O * 4 + (B * O + O * C + C + B * C) * itemsize)
    out = pl.pallas_call(
        _apply_kernel,
        grid=(nb,),
        in_specs=[pl.BlockSpec((O, O), lambda i: (0, 0)),
                  pl.BlockSpec((tb, O), lambda i: (i, 0)),
                  pl.BlockSpec((O, C), lambda i: (0, 0)),
                  pl.BlockSpec((1, C), lambda i: (0, 0))],
        out_specs=pl.BlockSpec((tb, C), lambda i: (i, 0)),
        out_shape=jax.ShapeDtypeStruct((B, C), x.dtype),
        compiler_params=pltpu.CompilerParams(
            dimension_semantics=("parallel",)),    # megacore-shardable on v7x
        cost_estimate=cost2,
    )(attn, v_all, params["wo"], params["bo"])
    return out


def init_params(key, in_channels, out_channels):
    """Deterministic synthetic init.  Weights stored [in, out] (transposed vs
    torch.nn.Linear's [out, in]); biases [1, out] for 2-D broadcasting."""
    ks = jax.random.split(key, 8)
    s_in = 1.0 / (in_channels ** 0.5)
    s_out = 1.0 / (out_channels ** 0.5)
    return {
        "wk": jax.random.uniform(ks[0], (in_channels, out_channels), jnp.float32, -s_in, s_in),
        "bk": jax.random.uniform(ks[1], (1, out_channels), jnp.float32, -s_in, s_in),
        "wq": jax.random.uniform(ks[2], (in_channels, out_channels), jnp.float32, -s_in, s_in),
        "bq": jax.random.uniform(ks[3], (1, out_channels), jnp.float32, -s_in, s_in),
        "wv": jax.random.uniform(ks[4], (in_channels, out_channels), jnp.float32, -s_in, s_in),
        "bv": jax.random.uniform(ks[5], (1, out_channels), jnp.float32, -s_in, s_in),
        "wo": jax.random.uniform(ks[6], (out_channels, in_channels), jnp.float32, -s_out, s_out),
        "bo": jax.random.uniform(ks[7], (1, in_channels), jnp.float32, -s_out, s_out),
    }


def ultimus_ref(x, p, dims):
    """Plain-JAX reference matching the PyTorch forward."""
    k = x @ p["wk"] + p["bk"]
    q = x @ p["wq"] + p["bq"]
    v = x @ p["wv"] + p["bv"]
    scores = (q.T @ k) / (dims ** 0.5)
    attn = jax.nn.softmax(scores, axis=-1)
    z = v @ attn
    return z @ p["wo"] + p["bo"]


if __name__ == "__main__":
    B, in_channels, out_channels, dims = 32, 32, 16, 16

    key = jax.random.PRNGKey(0)
    kx, kp = jax.random.split(key)
    # PyTorch forward views x as (batch, channels); feed it directly as 2-D.
    x = jax.random.normal(kx, (B, in_channels), jnp.float32)
    params = init_params(kp, in_channels, out_channels)

    # block_b=8 -> 4 grid steps: exercises the scores reduction and the
    # parallel apply phase, not just the single-block path.
    out = jax.block_until_ready(ultimus_block(x, params, dims, block_b=8))
    ref = ultimus_ref(x, params, dims)

    assert out.shape == (B, in_channels)
    # approx=True reciprocal (EUP) carries ~2^-12 relative error; verify at a
    # correspondingly relaxed tolerance (set approx=False for bit-tight runs).
    assert jnp.allclose(out, ref, atol=5e-3, rtol=5e-3), "mismatch vs reference"
    print("KERNEL_OK")
</pallas_src>

<mosaic_0001>
module attributes {stable_mosaic.version = 11 : i64} {
  func.func @_proj_scores_kernel(%arg0: i32, %arg1: memref<8x32xf32, #tpu.memory_space<vmem>>, %arg2: memref<32x48xf32, #tpu.memory_space<vmem>>, %arg3: memref<1x48xf32, #tpu.memory_space<vmem>>, %arg4: memref<16x16xf32, #tpu.memory_space<vmem>>, %arg5: memref<8x16xf32, #tpu.memory_space<vmem>>) attributes {dimension_semantics = [#tpu.dimension_semantics<arbitrary>], iteration_bounds = array<i64: 4>, scalar_prefetch = 0 : i64, scratch_operands = 0 : i64, tpu.core_type = #tpu.core_type<tc>, window_params = [{transform_indices = @transform_0, window_bounds = array<i64: 8, 32>}, {pipeline_mode = #tpu.pipeline_mode<synchronous>, transform_indices = @transform_1, window_bounds = array<i64: 32, 48>}, {pipeline_mode = #tpu.pipeline_mode<synchronous>, transform_indices = @transform_2, window_bounds = array<i64: 1, 48>}, {pipeline_mode = #tpu.pipeline_mode<synchronous>, transform_indices = @transform_3, window_bounds = array<i64: 16, 16>}, {transform_indices = @transform_4, window_bounds = array<i64: 8, 16>}]} {
    %c0 = arith.constant 0 : index
    %c0_0 = arith.constant 0 : index
    %0 = vector.load %arg1[%c0, %c0_0] : memref<8x32xf32, #tpu.memory_space<vmem>>, vector<8x32xf32>
    %c0_1 = arith.constant 0 : index
    %c0_2 = arith.constant 0 : index
    %1 = vector.load %arg2[%c0_1, %c0_2] : memref<32x48xf32, #tpu.memory_space<vmem>>, vector<32x48xf32>
    %cst = arith.constant dense<0.000000e+00> : vector<8x48xf32>
    %2 = tpu.matmul %0, %1, %cst {dimension_numbers = #tpu.dot_dimension_numbers<[1], [0], [0], [1], [0, 0, 1, 1], [], []>} : vector<8x32xf32>, vector<32x48xf32>, vector<8x48xf32> -> vector<8x48xf32>
    %c0_3 = arith.constant 0 : index
    %c0_4 = arith.constant 0 : index
    %3 = vector.load %arg3[%c0_3, %c0_4] : memref<1x48xf32, #tpu.memory_space<vmem>>, vector<1x48xf32>
    %4 = vector.broadcast %3 : vector<1x48xf32> to vector<8x48xf32>
    %5 = arith.addf %2, %4 : vector<8x48xf32>
    %6 = vector.extract_strided_slice %5 {offsets = [0, 0], sizes = [8, 16], strides = [1, 1]} : vector<8x48xf32> to vector<8x16xf32>
    %7 = vector.extract_strided_slice %5 {offsets = [0, 16], sizes = [8, 16], strides = [1, 1]} : vector<8x48xf32> to vector<8x16xf32>
    %8 = vector.extract_strided_slice %5 {offsets = [0, 32], sizes = [8, 16], strides = [1, 1]} : vector<8x48xf32> to vector<8x16xf32>
    %c0_5 = arith.constant 0 : index
    %c0_6 = arith.constant 0 : index
    %9 = vector.load %arg5[%c0_5, %c0_6] : memref<8x16xf32, #tpu.memory_space<vmem>>, vector<8x16xf32>
    tpu.vector_store %arg5[%c0_5, %c0_6], %8 {strides = array<i32>} : memref<8x16xf32, #tpu.memory_space<vmem>>, vector<8x16xf32>,
    %c0_i32 = arith.constant 0 : i32
    %10 = arith.cmpi eq, %arg0, %c0_i32 : i32
    %11 = arith.extui %10 : i1 to i32
    %c0_i32_7 = arith.constant 0 : i32
    %12 = arith.cmpi ne, %11, %c0_i32_7 : i32
    scf.if %12 {
      %cst_14 = arith.constant 0.000000e+00 : f32
      %20 = vector.broadcast %cst_14 : f32 to vector<16x16xf32>
      %c0_15 = arith.constant 0 : index
      %c0_16 = arith.constant 0 : index
      %21 = vector.load %arg4[%c0_15, %c0_16] : memref<16x16xf32, #tpu.memory_space<vmem>>, vector<16x16xf32>
      tpu.vector_store %arg4[%c0_15, %c0_16], %20 {strides = array<i32>} : memref<16x16xf32, #tpu.memory_space<vmem>>, vector<16x16xf32>,
    } else {
    }
    %c0_8 = arith.constant 0 : index
    %c0_9 = arith.constant 0 : index
    %13 = vector.load %arg4[%c0_8, %c0_9] : memref<16x16xf32, #tpu.memory_space<vmem>>, vector<16x16xf32>
    %cst_10 = arith.constant dense<0.000000e+00> : vector<16x16xf32>
    %14 = tpu.matmul %7, %6, %cst_10 {dimension_numbers = #tpu.dot_dimension_numbers<[0], [0], [1], [1], [0, 1, 1, 1], [], []>} : vector<8x16xf32>, vector<8x16xf32>, vector<16x16xf32> -> vector<16x16xf32>
    %15 = arith.addf %13, %14 : vector<16x16xf32>
    %c0_11 = arith.constant 0 : index
    %c0_12 = arith.constant 0 : index
    %16 = vector.load %arg4[%c0_11, %c0_12] : memref<16x16xf32, #tpu.memory_space<vmem>>, vector<16x16xf32>
    tpu.vector_store %arg4[%c0_11, %c0_12], %15 {strides = array<i32>} : memref<16x16xf32, #tpu.memory_space<vmem>>, vector<16x16xf32>,
    %c3_i32 = arith.constant 3 : i32
    %17 = arith.cmpi eq, %arg0, %c3_i32 : i32
    %18 = arith.extui %17 : i1 to i32
    %c0_i32_13 = arith.constant 0 : i32
    %19 = arith.cmpi ne, %18, %c0_i32_13 : i32
    scf.if %19 {
      %c0_14 = arith.constant 0 : index
      %c0_15 = arith.constant 0 : index
      %20 = vector.load %arg4[%c0_14, %c0_15] : memref<16x16xf32, #tpu.memory_space<vmem>>, vector<16x16xf32>
      %cst_16 = arith.constant dense<0xFF800000> : vector<16xf32>
      %21 = vector.multi_reduction <maximumf>, %20, %cst_16 [1] : vector<16x16xf32> to vector<16xf32>
      %22 = vector.shape_cast %21 : vector<16xf32> to vector<16x1xf32>
      %23 = vector.broadcast %22 : vector<16x1xf32> to vector<16x16xf32>
      %24 = arith.subf %20, %23 : vector<16x16xf32>
      %25 = math.exp %24 : vector<16x16xf32>
      %cst_17 = arith.constant dense<0.000000e+00> : vector<16xf32>
      %26 = vector.multi_reduction <add>, %25, %cst_17 [1] : vector<16x16xf32> to vector<16xf32>
      %27 = vector.shape_cast %26 : vector<16xf32> to vector<16x1xf32>
      %28 = tpu.reciprocal %27 {approx = true} : vector<16x1xf32> -> vector<16x1xf32>
      %29 = vector.broadcast %28 : vector<16x1xf32> to vector<16x16xf32>
      %30 = arith.mulf %25, %29 : vector<16x16xf32>
      %c0_18 = arith.constant 0 : index
      %c0_19 = arith.constant 0 : index
      %31 = vector.load %arg4[%c0_18, %c0_19] : memref<16x16xf32, #tpu.memory_space<vmem>>, vector<16x16xf32>
      tpu.vector_store %arg4[%c0_18, %c0_19], %30 {strides = array<i32>} : memref<16x16xf32, #tpu.memory_space<vmem>>, vector<16x16xf32>,
    } else {
    }
    return
  }
  func.func @transform_0(%arg0: i32) -> (i32, i32) {
    %c0_i32 = arith.constant 0 : i32
    %c0_i32_0 = arith.constant 0 : i32
    return %arg0, %c0_i32 : i32, i32
  }
  func.func @transform_1(%arg0: i32) -> (i32, i32) {
    %c0_i32 = arith.constant 0 : i32
    %c0_i32_0 = arith.constant 0 : i32
    %c0_i32_1 = arith.constant 0 : i32
    return %c0_i32, %c0_i32_0 : i32, i32
  }
  func.func @transform_2(%arg0: i32) -> (i32, i32) {
    %c0_i32 = arith.constant 0 : i32
    %c0_i32_0 = arith.constant 0 : i32
    %c0_i32_1 = arith.constant 0 : i32
    return %c0_i32, %c0_i32_0 : i32, i32
  }
  func.func @transform_3(%arg0: i32) -> (i32, i32) {
    %c0_i32 = arith.constant 0 : i32
    %c0_i32_0 = arith.constant 0 : i32
    %c0_i32_1 = arith.constant 0 : i32
    return %c0_i32, %c0_i32_0 : i32, i32
  }
  func.func @transform_4(%arg0: i32) -> (i32, i32) {
    %c0_i32 = arith.constant 0 : i32
    %c0_i32_0 = arith.constant 0 : i32
    return %arg0, %c0_i32 : i32, i32
  }
}

</mosaic_0001>

<bundles_post_ra>
// kernel: tpu_custom_call.1
= control target key start
LH: loop header
LB: loop body
LE: loop exit
PB: predicated region body
PF: predicated region fallthrough
CT: control target
= control target key end

     0   :  { %10 = vsyncpa [#allocation3], 0  ;;  %s865_s0 = inlined_call_operand.hbm [shape: f32[32,32], index: 0, kind: input, shape index: {}]   ;;  %s866_s1 = inlined_call_operand.hbm [shape: f32[32,48], index: 1, kind: input, shape index: {}]   ;;  %s867_s2 = inlined_call_operand.vmem [shape: f32[1,48], index: 2, kind: input, shape index: {}]   ;;  %s868_s3 = inlined_call_operand.hbm [shape: f32[16,16], index: 3, kind: output, shape index: {0}]   ;;  %s869_s4 = inlined_call_operand.vmem [shape: f32[32,16], index: 4, kind: output, shape index: {1}]  }
   0x1   :  { %12 = vsyncpa [#allocation3 + $0x1], 0 }
   0x2   :  { %13 = vsyncpa [#allocation6], 0 }
   0x3   :  { %14 = vsyncpa [#allocation4], 0  ;;  %s740_s15 = smov 0   ;;  %s742_s16 = smov 0  }
   0x4   :  { %s744_s17 = smov 0   ;;  %s746_s18 = smov 0  }
   0x5 LB: > { %s151_s21 = sshll.u32 %s866_s1, 4  ;;  %s762_s22 = sadd.s32 4294967295, %s704_s18   ;;  %s704_s18 = sphi %s746_s18, %s876_s18   ;;  %s700_s17 = sphi %s744_s17, %s875_s17   ;;  %s696_s16 = sphi %s742_s16, %s874_s16   ;;  %s692_s15 = sphi %s740_s15, %s873_s15   ;;  %s152_s21 = int_to_ptr.hbm [resolvable:$true] %s151_s21 }
   0x6   : > { %p481_p0 = scmp.ge.s32.totalorder %s704_s18, 1  ;;  %p41_p1 = scmp.eq.s32.totalorder %s762_s22, 0 }
   0x7   : > { %p140_p2 = scmp.lt.s32.totalorder %s704_s18, 5  ;;  %p482_p3 = scmp.ne.s32.totalorder %s762_s22, 0 }
   0x8   : > { %s706_s24 = smov [#allocation5]   ;;  %s707_s26 = smov 128  }
   0x9   : > { %p768_p4 = pnand %p481_p0, %p140_p2  ;;  %s153_s25 = sshll.u32 %s706_s24, 4  ;;  %s154_s25 = int_to_ptr.vmem [resolvable:$true] %s153_s25 }
   0xa   : > { %s708_s27 = smov 8   ;;  %s777_s28 = sadd.s32 1, %s704_s18  }
   0xb   : > { %p510_p5 = pneg %p768_p4  ;;  %s24_s29 = ssub.s32 %s704_s18, %s777_s28 }
   0xc   : > { %s27_s30 = sadd.s32 1, %s700_s17  ;;  %p25_p7 = scmp.eq.s32.totalorder %s24_s29, 0 }
   0xd   : > { %p511_p6 = pnand %p510_p5, %p41_p1  ;;  %p34_p8 = scmp.ne.s32.totalorder %s700_s17, %s696_s16 }
   0xe   : > { %p35_p9 = scmp.eq.s32.totalorder %s704_s18, 0  ;;  %p40_p10 = scmp.ne.s32.totalorder %s696_s16, %s692_s15 }
   0xf   : > { %513 = dma.hbm_to_vmem [thread:$0]  (!%p511_p6), %s152_s21, 512, %s154_s25, [#allocation6], %s707_s26, %s707_s26, %s708_s27  }
  0x10   : > { %s787_s5 = scalar_select %p25_p7, %s700_s17, %s27_s30  }
  0x11   : > { %p36_p11 = por %p35_p9, %p34_p8  ;;  %p791_p12 = por %p41_p1, %p40_p10 }
  0x12   : > { %p519_p13 = scmp.lt.s32.totalorder %s704_s18, 4  ;;  %s170_s7 = sand.u32 1, %s700_s17  }
  0x13   : > { %s484_s8 = sshll.u32 %s170_s7, 3  ;;  %s485_s9 = sshll.u32 %s704_s18, 3 }
  0x14   : > { %s178_s12 = scalar_lea.hbm %s865_s0, %s485_s9  ;;  %s174_s13 = scalar_lea.vmem [#allocation2], %s484_s8 }
  0x15   : > { %s182_s14 = sshll.u32 %s174_s13, 4  ;;  %s180_s19 = sshll.u32 %s178_s12, 4  ;;  %s183_s14 = int_to_ptr.vmem [resolvable:$true] %s182_s14  ;;  %s181_s19 = int_to_ptr.hbm [resolvable:$true] %s180_s19 }
  0x16   : > { %p801_p0 = pnand %p519_p13, %p36_p11  ;;  %s171_s20 = scalar_lea.sflag [#allocation3], %s170_s7 }
  0x17   : > { %s604_s21 = sshra.s32 %s181_s19, 4  ;;  %s611_s26 = scalar_lea.hbm %s865_s0, 32  ;;  %s605_s21 = int_to_ptr.hbm [resolvable:$true] %s604_s21 }
  0x18   : > { %s606_s24 = scalar_lea.hbm %s605_s21, 8  ;;  %p608_p5 = pneg %p801_p0 }
  0x19   : > { %p607_p2 = scmp.ne.s32.totalorder %s605_s21, %s606_s24  ;;  %p612_p8 = scmp.lt.s32.totalorder %s605_s21, %s865_s0 }
  0x1a   : > { %p613_p9 = scmp.lt.s32.totalorder %s611_s26, %s606_s24 }
  0x1b   : > { %p609_p6 = pnand %p608_p5, %p607_p2 }
  0x1c   : > { %p614_p10 = por %p613_p9, %p612_p8 }
  0x1d   : > { %p610_p7 = pneg %p609_p6 }
  0x1f   : > { %p615_p11 = pnand %p614_p10, %p610_p7 }
  0x21   : > { %618 = shalt.err (!%p615_p11)
}
  0x22   : > { %517 = dma.hbm_to_vmem [thread:$0]  (!%p801_p0), %s181_s19, 128, %s183_s14, %s171_s20  }
  0x23   : > { %191 = sbr.rel (%p768_p4) target bundleno = 992 (0x3e0), region = 32  ;;  %s193_s30 = sand.u32 (!%p768_p4), 1, %s696_s16  }
  0x24   : > { %s487_s7 = sshll.u32 (!%p768_p4), %s193_s30, 3  ;;  %s194_s8 = scalar_lea.sflag (!%p768_p4), [#allocation3], %s193_s30 }
  0x25   : > { %s197_s9 = scalar_lea.vmem (!%p768_p4), [#allocation2], %s487_s7 }
  0x28   : > { %679 = dma.done.wait (%p791_p12), %s194_s8, 128  }
  0x29   : > { %681 = vsyncadd (%p791_p12), %s194_s8, 4294967168 }
  0x2a   : > { %683 = dma.done.wait (%p41_p1), [#allocation6], 512  }
  0x2b   : > { %685 = vsyncadd (%p41_p1), [#allocation6], 4294966784  ;;  %v235_v0 = vld [vmem:[#allocation5 + $0x18] sm:$0xff]  ;;  %v234_v1 = vld [vmem:[#allocation5 + $0x10] sm:$0xff]  ;;  %vm240_vm0 = vcmask 261120   ;;  %s709_s10 = smov 96  }
  0x2c   : > { %256 = vmatpush.msra.mxu0 %v235_v0  ;;  %v233_v2 = vld [vmem:[#allocation5 + $0x8] sm:$0xff]  ;;  %v232_v3 = vld [vmem:[#allocation5] sm:$0xff]  ;;  %v231_v4 = vld [vmem:[%s197_s9] sm:$0xff]  ;;  %p227_p1 = scmp.lt.s32.totalorder %s762_s22, 3  ;;  %vm268_vm1 = vcmask 130048  }
  0x2d   : > { %v565_v5 = vld [vmem:[%s867_s2] ss:$0 sm:$0xff] }
  0x2e   : > { %257 = vmatpush.msra.mxu0 %v234_v1  ;;  %s228_s11 = scalar_select %p227_p1, %s762_s22, 3 }
  0x30   : > { %258 = vmatpush.msra.mxu0 %v233_v2  ;;  %s489_s12 = sshll.u32 %s228_s11, 3 }
  0x31   : > { %s230_s19 = scalar_lea.vmem %s869_s4, %s489_s12 }
  0x32   : > { %259 = vmatpush.msra.mxu0 %v232_v3 }
  0x33   : > { %490 = vmatmul.msk.f32.vlgmr.msra.gmra.mxu0 %vm240_vm0, %v231_v4 }
  0xb0   : > { %v261_v6 = vpop.f32.mrf.mxu0 }
  0xb1   : > { %v262_v7 = vadd.f32 %v565_v5, %v261_v6 }
  0xb3   : > { %265 = vrot.lane.b32.xlu0 %v262_v7, %s709_s10 }
 0x122   : > { %273 = sbr.rel (%p482_p3) target bundleno = 298 (0x12a), region = 44 }
 0x125   : > { %v266_v8 = vpop.permute.xlu0 %265 }
 0x126   : > { %269 = vst.msk [vmem:[%s230_s19] sm:$0xff] %vm268_vm1, %v266_v8 }
 0x127   : > { %v710_v9 = vmov 0.0  }
 0x128   : > { %274 = vst.msk [vmem:[#allocation7] sm:$0xff] %vm268_vm1, %v710_v9 }
 0x129   : > { %275 = vst.msk [vmem:[#allocation7 + $0x8] sm:$0xff] %vm268_vm1, %v710_v9 }
 0x12a PF: > { %335 = vmatpush.msra.mxu1 %v262_v7  ;;  %499 = vmatpush.msra.mxu2 %v262_v7  ;;  %s711_s15 = smov 112   ;;  %vm313_vm2 = vcmask 64512   ;;  %p494_p3 = scmp.ne.s32.totalorder %s762_s22, 3 }
 0x12b   : > { %278 = vrot.lane.b32.xlu0 %v262_v7, %s711_s15 }
 0x12f   : > { %v276_v13 = vld [vmem:[#allocation7] sm:$0xff] }
 0x130   : > { %v277_v16 = vld [vmem:[#allocation7 + $0x8] sm:$0xff] }
 0x19d   : > { %v279_v10 = vpop.permute.xlu0 %278 }
 0x19e   : > { %281 = vxpose.xlu0.b32.start.end [1/1] (short) (narrow) %v279_v10, 16 }
 0x242   : > { %v297_v11 = vpop.trf.xlu0 }
 0x243   : > { %492 = vmatmul.msk.f32.vlgmr.msra.gmra.mxu1 %vm313_vm2, %v297_v11 }
 0x24a   : > { %v298_v12 = vpop.trf.xlu0 }
 0x24b   : > { %493 = vmatmul.msk.f32.vlgmr.msra.gmra.mxu2 %vm313_vm2, %v298_v12 }
 0x2c0   : > { %v337_v14 = vpop.f32.mrf.mxu1 }
 0x2c1   : > { %v343_v15 = vadd.f32 %v337_v14, %v276_v13 }
 0x2c3   : > { %345 = vst.msk [vmem:[#allocation7] sm:$0xff] %vm268_vm1, %v343_v15 }
 0x2cd   : > { %350 = sbr.rel (%p494_p3) target bundleno = 986 (0x3da), region = 48 }
 0x2ce   : > { %v340_v17 = vpop.f32.mrf.mxu2 }
 0x2cf   : > { %v344_v18 = vadd.f32 %v340_v17, %v277_v16 }
 0x2d1   : > { %346 = vst.msk [vmem:[#allocation7 + $0x8] sm:$0xff] %vm268_vm1, %v344_v18 }
 0x2d2   : > { %v351_v19 = vld [vmem:[#allocation7] sm:$0xff] }
 0x2d3   : > { %v353_v20 = vsel %vm268_vm1, %v351_v19, -inf }
 0x2d4   : > { %354 = vmax.xlane.f32.xlu0 %v353_v20 }
 0x2d8   : > { %v352_v21 = vld [vmem:[#allocation7 + $0x8] sm:$0xff] }
 0x2d9   : > { %v356_v22 = vsel %vm268_vm1, %v352_v21, -inf }
 0x2dc   : > { %357 = vmax.xlane.f32.xlu0 %v356_v22 }
 0x347   : > { %v355_v23 = vpop.xlane.xlu0 %354 }
 0x348   : > { %v359_v24 = vsub.f32 %v351_v19, %v355_v23 }
 0x34a   : > { %v361_v25 = vmul.f32 1.442695, %v359_v24 }
 0x34c   : > { %566 = vpow2.f32 %v361_v25 }
 0x34f   : > { %v358_v26 = vpop.xlane.xlu0 %357 }
 0x350   : > { %v360_v27 = vsub.f32 %v352_v21, %v358_v26 }
 0x352   : > { %v567_v28 = vpop.eup %566  ;;  %v363_v29 = vmul.f32 1.442695, %v360_v27 }
 0x353   : > { %v365_v30 = vsel %vm268_vm1, %v567_v28, 0.0 }
 0x354   : > { %568 = vpow2.f32 %v363_v29  ;;  %366 = vadd.xlane.f32.xlu1 %v365_v30 }
 0x35a   : > { %v569_v31 = vpop.eup %568 }
 0x35b   : > { %v368_v32 = vsel %vm268_vm1, %v569_v31, 0.0 }
 0x35c   : > { %369 = vadd.xlane.f32.xlu1 %v368_v32 }
 0x3c7   : > { %v367_v33 = vpop.xlane.xlu1 %366 }
 0x3c8   : > { %570 = vrcp.f32 %v367_v33 }
 0x3ce   : > { %v571_v34 = vpop.eup %570 }
 0x3cf   : > { %v373_v35 = vmul.f32 %v571_v34, %v567_v28  ;;  %v370_v36 = vpop.xlane.xlu1 %369 }
 0x3d0   : > { %572 = vrcp.f32 %v370_v36 }
 0x3d1   : > { %375 = vst.msk [vmem:[#allocation7] sm:$0xff] %vm268_vm1, %v373_v35 }
 0x3d6   : > { %v573_v37 = vpop.eup %572 }
 0x3d7   : > { %v374_v38 = vmul.f32 %v573_v37, %v569_v31 }
 0x3d9   : > { %376 = vst.msk [vmem:[#allocation7 + $0x8] sm:$0xff] %vm268_vm1, %v374_v38 }
 0x3da PF: > { %p521_p4 = scmp.eq.s32.totalorder %s762_s22, 3  ;;  %s712_s20 = smov [#allocation7]  }
 0x3db   : > { %s386_s21 = sshll.u32 %s712_s20, 4  ;;  %s388_s25 = sshll.u32 %s868_s3, 4  ;;  %s387_s21 = int_to_ptr.vmem [resolvable:$true] %s386_s21  ;;  %s389_s25 = int_to_ptr.hbm [resolvable:$true] %s388_s25 }
 0x3dc   : > { %s713_s26 = smov 128   ;;  %s714_s27 = smov 8  }
 0x3dd   : > { %507 = dma.vmem_to_hbm [thread:$0]  (%p521_p4), %s387_s21, 256, %s389_s25, [#allocation4], %s713_s26, %s713_s26, %s714_s27  }
 0x3de   : > { %687 = dma.done.wait (%p521_p4), [#allocation4], 256  }
 0x3df   : > { %689 = vsyncadd (%p521_p4), [#allocation4], 4294967040 }
 0x3e0 PF: > { %p17_p12 = scmp.ge.s32.totalorder %s777_s28, 6   ;;  %s873_s15 = smov %s696_s16 }
 0x3e1   : > { %s874_s16 = smov %s700_s17  ;;  %s875_s17 = smov %s787_s5 }
 0x3e2   : > { %s876_s18 = smov %s777_s28  ;;  %19 = sbr.rel (!%p17_p12) target bundleno = 5 (0x5), region = 93 }
 0x3e7   :  { %415 = vsyncpa [#allocation3], 1 }
 0x3e8   :  { %417 = vsyncpa [#allocation3 + $0x1], 1 }
 0x3e9   :  { %418 = vsyncpa [#allocation6], 1 }
 0x3ea   :  { %419 = vsyncpa [#allocation4], 1 }
 0x3eb   :  { %421 = vsyncpa [#allocation4 + $0x1], 1 }

</bundles_post_ra>
